<compile_context>
chip_gen: v7x
topology: tpu7x:2x2x1
jax: 0.10.0
libtpu: 0.0.40
codegen_flags: <defaults>
</compile_context>

<pallas_src>
import jax
import jax.numpy as jnp
from jax.experimental import pallas as pl
from jax.experimental.pallas import tpu as pltpu

_EPS = 1e-8
_LANE = 128


def _f32(x):
    return x if x.dtype == jnp.float32 else x.astype(jnp.float32)


def _cos_logsoftmax_kernel(l_ref, r_ref, o_ref):
    """l_ref, r_ref: (Bb, H) blocks.  o_ref: (2, Bb) lane-dense log-probs."""
    H = l_ref.shape[-1]
    ones = jnp.ones((8, H), jnp.float32)

    def rowsum_t(prod):
        # (Bb, H) -> (8, Bb): per-row sum of `prod`, replicated over the 8
        # sublanes, with the batch axis moved onto lanes.  One MXU op does
        # both the reduction and the sublane->lane "transpose" needed for a
        # lane-dense (2, Bb) output (same dimension numbers as
        # pl.dot(..., trans_b=True)).
        return jax.lax.dot_general(
            ones, prod,
            dimension_numbers=(((1,), (1,)), ((), ())),
            preferred_element_type=jnp.float32,
            precision=jax.lax.Precision.HIGHEST)

    # Per-term upcast (identity for f32 inputs; for bf16 only one f32
    # (Bb, H) temporary is forced live at a time).
    dot = rowsum_t(_f32(l_ref[...]) * _f32(r_ref[...]))       # (8, Bb)
    nl2 = rowsum_t(jnp.square(_f32(l_ref[...])))              # (8, Bb)
    nr2 = rowsum_t(jnp.square(_f32(r_ref[...])))              # (8, Bb)

    # cos = dot / (max(||l||, eps) * max(||r||, eps)); rsqrt on the squared
    # norms with an eps^2 clamp is algebraically identical and runs on the EUP.
    cos = (dot
           * jax.lax.rsqrt(jnp.maximum(nl2, _EPS * _EPS))
           * jax.lax.rsqrt(jnp.maximum(nr2, _EPS * _EPS)))    # (8, Bb)

    # Closed-form 2-class log_softmax of logits [1 - cos, cos]:
    #   d = cos - (1 - cos) = 2*cos - 1 ; lse = logaddexp(0, d)
    #   out0 = -lse ; out1 = d - lse
    d = 2.0 * cos - 1.0
    lse = jnp.maximum(d, 0.0) + jnp.log(1.0 + jnp.exp(-jnp.abs(d)))

    row = jax.lax.broadcasted_iota(jnp.int32, cos.shape, 0)   # (8, Bb)
    out = jnp.where(row == 0, -lse, d - lse)                  # row0=out0, rows1..=out1
    o_ref[...] = out[0:2, :].astype(o_ref.dtype)              # (2, Bb)


def _vmem_budget_bytes():
    """Generation-aware budget for pipeline buffers / scoped VMEM."""
    try:
        phys = pltpu.get_tpu_info().vmem_capacity_bytes
    except Exception:
        phys = 64 * 1024 * 1024      # v7x per-TensorCore size: safe lower bound
    # Stay well under physical VMEM: 32 MiB on v7x (64 MiB phys),
    # 64 MiB on v5e/v6e (128 MiB phys).
    return int(min(phys // 2, 64 * 1024 * 1024))


def _block_footprint_bytes(block_b, H, in_itemsize):
    in_bytes = 2 * 2 * block_b * H * in_itemsize   # l + r blocks, double-buffered
    out_bytes = 2 * 2 * block_b * 4                # (2, block_b) f32, double-buffered
    tmp_bytes = 2 * block_b * H * 4                # in-kernel f32 product temporaries
    return in_bytes + out_bytes + tmp_bytes + (64 * 1024)


def cos_similarity_forward(lvec, rvec, *, block_b=None):
    """lvec, rvec: (B, mem_dim) -> (B, 2) float32 log-probs.

    B == 1 matches the original module's forward ((1, 2) output).
    """
    assert lvec.shape == rvec.shape and lvec.ndim == 2
    B, H = lvec.shape
    budget = _vmem_budget_bytes()
    itemsize = jnp.dtype(lvec.dtype).itemsize

    if block_b is None:
        if _block_footprint_bytes(B, H, itemsize) <= budget:
            block_b = B            # single un-gridded call: no pipeline bookkeeping
        else:
            # Largest 128-row multiple (capped) that fits the VMEM budget; any
            # problem reaching this path yields many blocks, so the pipeline
            # has depth and v7x can shard the "parallel" batch axis.
            bb = min(4096, max(_LANE, (B // _LANE) * _LANE))
            while bb > _LANE and _block_footprint_bytes(bb, H, itemsize) > budget:
                bb -= _LANE
            block_b = max(bb, _LANE)

    if block_b >= B:
        # Whole problem in one invocation: no grid.
        out = pl.pallas_call(
            _cos_logsoftmax_kernel,
            out_shape=jax.ShapeDtypeStruct((2, B), jnp.float32),
            in_specs=[pl.BlockSpec(memory_space=pltpu.MemorySpace.VMEM),
                      pl.BlockSpec(memory_space=pltpu.MemorySpace.VMEM)],
            out_specs=pl.BlockSpec(memory_space=pltpu.MemorySpace.VMEM),
            compiler_params=pltpu.CompilerParams(vmem_limit_bytes=budget),
        )(lvec, rvec)
        return out.T                                           # (B, 2)

    # Gridded path for large B.  Output blocks need a 128-multiple lane dim.
    block_b = max(_LANE, (block_b // _LANE) * _LANE)
    n_blocks = pl.cdiv(B, block_b)
    b_pad = n_blocks * block_b
    if b_pad != B:
        # Zero padding is numerically safe (zero norms are eps-clamped).
        pad = ((0, b_pad - B), (0, 0))
        lvec = jnp.pad(lvec, pad)
        rvec = jnp.pad(rvec, pad)

    out = pl.pallas_call(
        _cos_logsoftmax_kernel,
        out_shape=jax.ShapeDtypeStruct((2, b_pad), jnp.float32),
        grid=(n_blocks,),
        in_specs=[pl.BlockSpec((block_b, H), lambda i: (i, 0)),
                  pl.BlockSpec((block_b, H), lambda i: (i, 0))],
        out_specs=pl.BlockSpec((2, block_b), lambda i: (0, i)),
        compiler_params=pltpu.CompilerParams(
            dimension_semantics=("parallel",),
            vmem_limit_bytes=budget),
    )(lvec, rvec)
    return out[:, :B].T                                        # (B, 2)


def _reference(lvec, rvec):
    l = lvec.astype(jnp.float32)
    r = rvec.astype(jnp.float32)
    dot = jnp.sum(l * r, axis=-1)
    nl = jnp.sqrt(jnp.sum(l * l, axis=-1))
    nr = jnp.sqrt(jnp.sum(r * r, axis=-1))
    cos = dot / (jnp.maximum(nl, _EPS) * jnp.maximum(nr, _EPS))    # (B,)
    logits = jnp.stack([1.0 - cos, cos], axis=-1)                  # (B, 2)
    return jax.nn.log_softmax(logits, axis=-1)


if __name__ == "__main__":
    key = jax.random.PRNGKey(0)
    k1, k2, k3, k4, k5, k6 = jax.random.split(key, 6)
    mem_dim = 32

    # 1) Module-faithful single pair: (1, mem_dim) -> (1, 2)  (no-grid path).
    lvec = jax.random.normal(k1, (1, mem_dim), dtype=jnp.float32)
    rvec = jax.random.normal(k2, (1, mem_dim), dtype=jnp.float32)
    out = jax.block_until_ready(cos_similarity_forward(lvec, rvec))
    ref = _reference(lvec, rvec)
    assert out.shape == (1, 2) and out.dtype == jnp.float32
    assert jnp.allclose(out, ref, atol=1e-4, rtol=1e-4), (out, ref)

    # 2) Small batch: (16, mem_dim) -> (16, 2)  (still a single un-gridded call).
    B = 16
    lb = jax.random.normal(k3, (B, mem_dim), dtype=jnp.float32)
    rb = jax.random.normal(k4, (B, mem_dim), dtype=jnp.float32)
    outb = jax.block_until_ready(cos_similarity_forward(lb, rb))
    refb = _reference(lb, rb)
    assert outb.shape == (B, 2) and outb.dtype == jnp.float32
    assert jnp.allclose(outb, refb, atol=1e-4, rtol=1e-4), (outb, refb)

    # 3) Exercise the gridded + padded path explicitly (block_b override).
    B = 200
    lg = jax.random.normal(k5, (B, mem_dim), dtype=jnp.float32)
    rg = jax.random.normal(k6, (B, mem_dim), dtype=jnp.float32)
    outg = jax.block_until_ready(cos_similarity_forward(lg, rg, block_b=128))
    refg = _reference(lg, rg)
    assert outg.shape == (B, 2) and outg.dtype == jnp.float32
    assert jnp.allclose(outg, refg, atol=1e-4, rtol=1e-4), (outg, refg)

    print("KERNEL_OK")
</pallas_src>

<mosaic_0001>
module attributes {stable_mosaic.version = 11 : i64} {
  func.func @_cos_logsoftmax_kernel(%arg0: memref<1x32xf32, #tpu.memory_space<vmem>>, %arg1: memref<1x32xf32, #tpu.memory_space<vmem>>, %arg2: memref<2x1xf32, #tpu.memory_space<vmem>>) attributes {dimension_semantics = [], scalar_prefetch = 0 : i64, scratch_operands = 0 : i64, tpu.core_type = #tpu.core_type<tc>} {
    %cst = arith.constant 1.000000e+00 : f32
    %0 = vector.broadcast %cst : f32 to vector<8x32xf32>
    %c0 = arith.constant 0 : index
    %c0_0 = arith.constant 0 : index
    %1 = vector.load %arg0[%c0, %c0_0] : memref<1x32xf32, #tpu.memory_space<vmem>>, vector<1x32xf32>
    %c0_1 = arith.constant 0 : index
    %c0_2 = arith.constant 0 : index
    %2 = vector.load %arg1[%c0_1, %c0_2] : memref<1x32xf32, #tpu.memory_space<vmem>>, vector<1x32xf32>
    %3 = arith.mulf %1, %2 : vector<1x32xf32>
    %cst_3 = arith.constant dense<0.000000e+00> : vector<8x1xf32>
    %4 = tpu.matmul %0, %3, %cst_3 {dimension_numbers = #tpu.dot_dimension_numbers<[1], [1], [0], [0], [0, 0, 1, 0], [], []>, precision = #tpu.contract_precision<fp32>} : vector<8x32xf32>, vector<1x32xf32>, vector<8x1xf32> -> vector<8x1xf32>
    %c0_4 = arith.constant 0 : index
    %c0_5 = arith.constant 0 : index
    %5 = vector.load %arg0[%c0_4, %c0_5] : memref<1x32xf32, #tpu.memory_space<vmem>>, vector<1x32xf32>
    %6 = arith.mulf %5, %5 : vector<1x32xf32>
    %cst_6 = arith.constant dense<0.000000e+00> : vector<8x1xf32>
    %7 = tpu.matmul %0, %6, %cst_6 {dimension_numbers = #tpu.dot_dimension_numbers<[1], [1], [0], [0], [0, 0, 1, 0], [], []>, precision = #tpu.contract_precision<fp32>} : vector<8x32xf32>, vector<1x32xf32>, vector<8x1xf32> -> vector<8x1xf32>
    %c0_7 = arith.constant 0 : index
    %c0_8 = arith.constant 0 : index
    %8 = vector.load %arg1[%c0_7, %c0_8] : memref<1x32xf32, #tpu.memory_space<vmem>>, vector<1x32xf32>
    %9 = arith.mulf %8, %8 : vector<1x32xf32>
    %cst_9 = arith.constant dense<0.000000e+00> : vector<8x1xf32>
    %10 = tpu.matmul %0, %9, %cst_9 {dimension_numbers = #tpu.dot_dimension_numbers<[1], [1], [0], [0], [0, 0, 1, 0], [], []>, precision = #tpu.contract_precision<fp32>} : vector<8x32xf32>, vector<1x32xf32>, vector<8x1xf32> -> vector<8x1xf32>
    %cst_10 = arith.constant 1.000000e-16 : f32
    %11 = vector.broadcast %cst_10 : f32 to vector<8x1xf32>
    %12 = arith.maximumf %7, %11 : vector<8x1xf32>
    %13 = math.rsqrt %12 : vector<8x1xf32>
    %14 = arith.mulf %4, %13 : vector<8x1xf32>
    %cst_11 = arith.constant 1.000000e-16 : f32
    %15 = vector.broadcast %cst_11 : f32 to vector<8x1xf32>
    %16 = arith.maximumf %10, %15 : vector<8x1xf32>
    %17 = math.rsqrt %16 : vector<8x1xf32>
    %18 = arith.mulf %14, %17 : vector<8x1xf32>
    %cst_12 = arith.constant 2.000000e+00 : f32
    %19 = vector.broadcast %cst_12 : f32 to vector<8x1xf32>
    %20 = arith.mulf %19, %18 : vector<8x1xf32>
    %cst_13 = arith.constant 1.000000e+00 : f32
    %21 = vector.broadcast %cst_13 : f32 to vector<8x1xf32>
    %22 = arith.subf %20, %21 : vector<8x1xf32>
    %cst_14 = arith.constant 0.000000e+00 : f32
    %23 = vector.broadcast %cst_14 : f32 to vector<8x1xf32>
    %24 = arith.maximumf %22, %23 : vector<8x1xf32>
    %25 = math.absf %22 : vector<8x1xf32>
    %cst_15 = arith.constant 0.000000e+00 : f32
    %26 = vector.broadcast %cst_15 : f32 to vector<8x1xf32>
    %27 = arith.subf %26, %25 : vector<8x1xf32>
    %28 = math.exp %27 : vector<8x1xf32>
    %cst_16 = arith.constant 1.000000e+00 : f32
    %29 = vector.broadcast %cst_16 : f32 to vector<8x1xf32>
    %30 = arith.addf %29, %28 : vector<8x1xf32>
    %31 = math.log %30 : vector<8x1xf32>
    %32 = arith.addf %24, %31 : vector<8x1xf32>
    %33 = tpu.iota {dimensions = array<i32: 0>} : vector<8x1xi32>
    %c0_i32 = arith.constant 0 : i32
    %34 = vector.broadcast %c0_i32 : i32 to vector<8x1xi32>
    %35 = arith.cmpi eq, %33, %34 : vector<8x1xi32>
    %cst_17 = arith.constant 0.000000e+00 : f32
    %36 = vector.broadcast %cst_17 : f32 to vector<8x1xf32>
    %37 = arith.subf %36, %32 : vector<8x1xf32>
    %38 = arith.subf %22, %32 : vector<8x1xf32>
    %39 = arith.select %35, %37, %38 : vector<8x1xi1>, vector<8x1xf32>
    %40 = vector.extract_strided_slice %39 {offsets = [0, 0], sizes = [2, 1], strides = [1, 1]} : vector<8x1xf32> to vector<2x1xf32>
    %c0_18 = arith.constant 0 : index
    %c0_19 = arith.constant 0 : index
    %41 = vector.load %arg2[%c0_18, %c0_19] : memref<2x1xf32, #tpu.memory_space<vmem>>, vector<2x1xf32>
    tpu.vector_store %arg2[%c0_18, %c0_19], %40 {strides = array<i32>} : memref<2x1xf32, #tpu.memory_space<vmem>>, vector<2x1xf32>,
    return
  }
}

</mosaic_0001>

<bundles_post_ra>
// kernel: tpu_custom_call.1
= control target key start
LH: loop header
LB: loop body
LE: loop exit
PB: predicated region body
PF: predicated region fallthrough
CT: control target
= control target key end

     0   :  { %7 = vsyncpa [#allocation3], 0  ;;  %s120_s9 = smov [#allocation2]   ;;  %s154_s0 = inlined_call_operand.hbm [shape: f32[1,32], index: 0, kind: input, shape index: {}]   ;;  %s155_s1 = inlined_call_operand.vmem [shape: f32[1,32], index: 1, kind: input, shape index: {}]   ;;  %s156_s2 = inlined_call_operand.vmem [shape: f32[2,1], index: 2, kind: output, shape index: {}]  }
   0x1   :  { %s14_s10 = sshll.u32 %s120_s9, 4  ;;  %s96_s13 = scalar_lea.hbm %s154_s0, 16  ;;  %s15_s10 = int_to_ptr.vmem [resolvable:$true] %s14_s10 }
   0x2   :  { %p97_p0 = scmp.ne.s32.totalorder %s154_s0, %s96_s13  ;;  %p100_p1 = scmp.lt.u32.totalorder %s96_s13, %s154_s0 }
   0x4   :  { %p102_p2 = pnand %p100_p1, %p97_p0 }
   0x6   :  { %105 = shalt.err (!%p102_p2)
}
   0x7   :  { %s106_s18 = scalar_lea.vmem %s15_s10, 16  ;;  %s110_s19 = scalar_lea.vmem %s15_s10, 32 }
   0x8   :  { %p107_p3 = scmp.ne.s32.totalorder %s15_s10, %s106_s18  ;;  %p111_p4 = scmp.lt.s32.totalorder %s15_s10, %s15_s10 }
   0x9   :  { %p112_p5 = scmp.lt.s32.totalorder %s110_s19, %s106_s18 }
   0xb   :  { %p113_p6 = por %p112_p5, %p111_p4 }
   0xd   :  { %p114_p7 = pnand %p113_p6, %p107_p3 }
   0xf   :  { %117 = shalt.err (!%p114_p7)
}
  0x10   :  { %17 = dma.hbm_to_vmem [thread:$0]  %s154_s0, 16, %s15_s10, [#allocation3]  }
  0x11   :  { %118 = dma.done.wait [#allocation3], 16  }
  0x12   :  { %119 = vsyncadd [#allocation3], 4294967280  ;;  %v27_v0 = vlaneseq  ;;  %v23_v3 = vld [vmem:[#allocation2] sm:$0x1]  ;;  %vm32_vm0 = vcmask 261120   ;;  %vm79_vm2 = vcmask 1024  }
  0x13   :  { %v24_v4 = vld [vmem:[%s155_s1] sm:$0x1]  ;;  %v36_v5 = vmul.f32 %v23_v3, %v23_v3 }
  0x14   :  { %v28_v1 = vshrl.u32 %v27_v0, 7  ;;  %v46_v6 = vmul.f32 %v24_v4, %v24_v4  ;;  %v25_v7 = vmul.f32 %v24_v4, %v23_v3 }
  0x16   :  { %v29_v2 = vsub.s32 0, %v28_v1  ;;  %vm75_vm1 = vcmp.eq.s32.totalorder %v28_v1, 0 }
  0x18   :  { %v41_v8 = vrot.slane %v36_v5, %v29_v2  ;;  %v51_v9 = vrot.slane %v46_v6, %v29_v2  ;;  %v30_v10 = vrot.slane %v25_v7, %v29_v2 }
  0x1a   :  { %v43_v11 = vsel %vm32_vm0, %v41_v8, 0.0  ;;  %v33_v12 = vsel %vm32_vm0, %v30_v10, 0.0  ;;  %v53_v13 = vsel %vm32_vm0, %v51_v9, 0.0 }
  0x1b   :  { %44 = vadd.xlane.f32.xlu0 %v43_v11  ;;  %34 = vadd.xlane.f32.xlu1 %v33_v12 }
  0x1f   :  { %54 = vadd.xlane.f32.xlu0 %v53_v13 }
  0xa8   :  { %v45_v14 = vpop.xlane.xlu0 %44  ;;  %v35_v19 = vpop.xlane.xlu1 %34 }
  0xa9   :  { %v56_v15 = vmax.f32 %v45_v14, 1e-16 }
  0xab   :  { %88 = vrsqrt.f32 %v56_v15 }
  0xac   :  { %v55_v16 = vpop.xlane.xlu0 %54 }
  0xad   :  { %v59_v17 = vmax.f32 %v55_v16, 1e-16 }
  0xaf   :  { %90 = vrsqrt.f32 %v59_v17 }
  0xb5   :  { %v89_v18 = vpop.eup %88 }
  0xb6   :  { %v58_v20 = vmul.f32 %v89_v18, %v35_v19 }
  0xb9   :  { %v91_v21 = vpop.eup %90 }
  0xba   :  { %v61_v22 = vmul.f32 %v91_v21, %v58_v20 }
  0xbc   :  { %v62_v23 = vmul.f32 2.0, %v61_v22 }
  0xbe   :  { %v86_v24 = vadd.f32 -1.0, %v62_v23 }
  0xc0   :  { %v65_v25 = vand.u32 2147483647, %v86_v24  ;;  %v64_v31 = vmax.f32 %v86_v24, 0.0 }
  0xc2   :  { %v66_v26 = vsub.f32 0.0, %v65_v25 }
  0xc4   :  { %v67_v27 = vmul.f32 1.442695, %v66_v26 }
  0xc6   :  { %92 = vpow2.f32 %v67_v27 }
  0xd0   :  { %v93_v28 = vpop.eup %92 }
  0xd1   :  { %v69_v29 = vadd.f32 1.0, %v93_v28 }
  0xd3   :  { %94 = vlog2.f32 %v69_v29 }
  0xdd   :  { %v95_v30 = vpop.eup %94 }
  0xde   :  { %v71_v32 = vmul.f32 0.6931472, %v95_v30 }
  0xe0   :  { %v72_v33 = vadd.f32 %v71_v32, %v64_v31 }
  0xe2   :  { %v76_v34 = vsub.f32 0.0, %v72_v33  ;;  %v77_v35 = vsub.f32 %v86_v24, %v72_v33 }
  0xe4   :  { %v78_v36 = vsel %vm75_vm1, %v76_v34, %v77_v35 }
  0xe5   :  { %80 = vst.msk [vmem:[%s156_s2] sm:$0x3] %vm79_vm2, %v78_v36 }
  0xe6   :  { %85 = vsyncpa [#allocation3], 1 }

</bundles_post_ra>
